<compile_context>
chip_gen: v6e
topology: v6e:2x2x1
jax: 0.10.0
libtpu: 0.0.40
codegen_flags: <defaults>
</compile_context>

<pallas_src>
import functools
import math

import jax
import jax.numpy as jnp
from jax.experimental import pallas as pl
from jax.experimental.pallas import tpu as pltpu


# ---------------------------------------------------------------------------
# Generation-aware tile defaults / VMEM limit
# ---------------------------------------------------------------------------

def _select_defaults():
    # Conservative defaults (safe for v7x's 64 MiB VMEM per TensorCore).
    tm, tn, tk = 256, 512, 512
    vmem = 48 * 1024 * 1024
    try:
        info = pltpu.get_tpu_info()
        cap = int(getattr(info, "vmem_capacity_bytes", 0) or 0)
        if cap >= 100 * 1024 * 1024:
            # v5e / v6e: 128 MiB VMEM -> bigger tiles amortize the ~0.35us
            # per-grid-step overhead and improve MXU residency.
            tm, tn, tk = 512, 1024, 512
            vmem = 96 * 1024 * 1024
        elif cap > 0:
            vmem = min(cap * 3 // 4, 48 * 1024 * 1024)
    except Exception:
        pass
    return tm, tn, tk, vmem


_TM_DEFAULT, _TN_DEFAULT, _TK_DEFAULT, _VMEM_LIMIT = _select_defaults()


def _round_up(x, m):
    return ((x + m - 1) // m) * m


def _tile_dim(dim, default):
    """Pick (tile, padded_dim).  Small dims stay un-padded (block == full dim,
    which satisfies the (8,128) BlockSpec rule); large dims are padded to a
    multiple of the default tile."""
    if dim <= default:
        return dim, dim
    return default, _round_up(dim, default)


def _pad2(a, rows, cols):
    pr, pc = rows - a.shape[0], cols - a.shape[1]
    if pr or pc:
        a = jnp.pad(a, ((0, pr), (0, pc)))
    return a


# ---------------------------------------------------------------------------
# Tiled matmul (+bias +activation) kernel
# ---------------------------------------------------------------------------

def _matmul_bias_act_kernel(x_ref, w_ref, b_ref, o_ref, acc_ref, *, act):
    @pl.when(pl.program_id(2) == 0)
    def _init():
        acc_ref[...] = jnp.zeros_like(acc_ref)

    acc_ref[...] += jnp.dot(x_ref[...], w_ref[...],
                            preferred_element_type=jnp.float32)

    # Bias is only read on the finalize step; its BlockSpec index does not
    # depend on k, so Pallas keeps the same block resident across the K axis
    # (no per-K-step DMA).
    @pl.when(pl.program_id(2) == pl.num_programs(2) - 1)
    def _finalize():
        y = acc_ref[...] + b_ref[...]          # broadcasts over rows or cols
        if act == "silu":
            y = y * jax.nn.sigmoid(y)
        elif act == "softplus":
            y = jax.nn.softplus(y)
        o_ref[...] = y.astype(o_ref.dtype)


def prepare_rhs(w):
    """Cast to bf16 and pad ONCE; reusable across many matmul calls.  Used for
    the data-consistency matrices so they are not re-cast / re-padded (a full
    HBM read+write of the largest operand) on every dc_forward call."""
    K, N = w.shape
    tk, Kp = _tile_dim(K, _TK_DEFAULT)
    tn, Np = _tile_dim(N, _TN_DEFAULT)
    return {"w": _pad2(jnp.asarray(w, jnp.bfloat16), Kp, Np),
            "K": K, "N": N, "tk": tk, "tn": tn, "Kp": Kp, "Np": Np}


def matmul_bias_act(x, w, b, act="none", bias_rows=False):
    """act(x @ w + b) as a tiled Pallas kernel.

    x: (M, K).  w: (K, N) raw array, or a dict from prepare_rhs (pre-padded
    bf16).  b: (N,) broadcast over rows, or (M,) broadcast over cols if
    bias_rows."""
    rhs = w if isinstance(w, dict) else prepare_rhs(w)
    M, K = x.shape
    assert K == rhs["K"]
    N, tk, tn = rhs["N"], rhs["tk"], rhs["tn"]
    Kp, Np = rhs["Kp"], rhs["Np"]
    tm, Mp = _tile_dim(M, _TM_DEFAULT)

    xb = _pad2(x.astype(jnp.bfloat16), Mp, Kp)
    wb = rhs["w"]

    if bias_rows:
        bb = _pad2(b.astype(jnp.float32).reshape(M, 1), Mp, 1)
        b_spec = pl.BlockSpec((tm, 1), lambda i, j, k: (i, 0))
    else:
        bb = _pad2(b.astype(jnp.float32).reshape(1, N), 1, Np)
        b_spec = pl.BlockSpec((1, tn), lambda i, j, k: (0, j))

    out = pl.pallas_call(
        functools.partial(_matmul_bias_act_kernel, act=act),
        out_shape=jax.ShapeDtypeStruct((Mp, Np), jnp.float32),
        grid=(Mp // tm, Np // tn, Kp // tk),
        in_specs=[pl.BlockSpec((tm, tk), lambda i, j, k: (i, k)),
                  pl.BlockSpec((tk, tn), lambda i, j, k: (k, j)),
                  b_spec],
        out_specs=pl.BlockSpec((tm, tn), lambda i, j, k: (i, j)),
        scratch_shapes=[pltpu.VMEM((tm, tn), jnp.float32)],
        compiler_params=pltpu.CompilerParams(
            dimension_semantics=("parallel", "parallel", "arbitrary"),
            vmem_limit_bytes=_VMEM_LIMIT),
    )(xb, wb, bb)
    return out[:M, :N]


# ---------------------------------------------------------------------------
# Fused LayerNorm + matmul kernel (SSM in_proj)
# ---------------------------------------------------------------------------

def _ln_matmul_kernel(x_ref, g_ref, bln_ref, w_ref, b_ref, o_ref):
    x = x_ref[...]                                   # (tm, D) f32
    mu = jnp.mean(x, axis=-1, keepdims=True)
    xc = x - mu
    var = jnp.mean(xc * xc, axis=-1, keepdims=True)
    xn = xc * jax.lax.rsqrt(var + 1e-5) * g_ref[...] + bln_ref[...]
    y = jnp.dot(xn.astype(jnp.bfloat16), w_ref[...],
                preferred_element_type=jnp.float32)
    o_ref[...] = (y + b_ref[...]).astype(o_ref.dtype)


def ln_matmul_bias(x, ln_g, ln_b, w, b):
    """LayerNorm(x) @ w + b.  K = feature dim stays untiled (small here)."""
    M, D = x.shape
    D2, N = w.shape
    assert D == D2
    tm, Mp = _tile_dim(M, _TM_DEFAULT)
    tn, Np = _tile_dim(N, _TN_DEFAULT)
    xb = _pad2(x.astype(jnp.float32), Mp, D)
    wb = _pad2(w.astype(jnp.bfloat16), D, Np)
    bb = _pad2(b.astype(jnp.float32).reshape(1, N), 1, Np)
    out = pl.pallas_call(
        _ln_matmul_kernel,
        out_shape=jax.ShapeDtypeStruct((Mp, Np), jnp.float32),
        grid=(Mp // tm, Np // tn),
        in_specs=[
            pl.BlockSpec((tm, D), lambda i, j: (i, 0)),
            pl.BlockSpec((1, D), lambda i, j: (0, 0)),
            pl.BlockSpec((1, D), lambda i, j: (0, 0)),
            pl.BlockSpec((D, tn), lambda i, j: (0, j)),
            pl.BlockSpec((1, tn), lambda i, j: (0, j)),
        ],
        out_specs=pl.BlockSpec((tm, tn), lambda i, j: (i, j)),
        compiler_params=pltpu.CompilerParams(
            dimension_semantics=("parallel", "parallel"),
            vmem_limit_bytes=_VMEM_LIMIT),
    )(xb, ln_g.astype(jnp.float32).reshape(1, D),
      ln_b.astype(jnp.float32).reshape(1, D), wb, bb)
    return out[:M, :N]


# ---------------------------------------------------------------------------
# Fused SiLU-gate + matmul kernel (SSM out_proj)
# ---------------------------------------------------------------------------

def _gated_matmul_kernel(y_ref, z_ref, w_ref, b_ref, o_ref):
    z = z_ref[...]
    g = (y_ref[...] * (z * jax.nn.sigmoid(z))).astype(jnp.bfloat16)
    o = jnp.dot(g, w_ref[...], preferred_element_type=jnp.float32) + b_ref[...]
    o_ref[...] = o.astype(o_ref.dtype)


def gated_matmul_bias(y, z, w, b):
    """(y * silu(z)) @ w + b.  K = d_inner stays untiled (small here)."""
    M, K = y.shape
    K2, N = w.shape
    assert K == K2 and z.shape == y.shape
    tm, Mp = _tile_dim(M, _TM_DEFAULT)
    tn, Np = _tile_dim(N, _TN_DEFAULT)
    yb = _pad2(y.astype(jnp.float32), Mp, K)
    zb = _pad2(z.astype(jnp.float32), Mp, K)
    wb = _pad2(w.astype(jnp.bfloat16), K, Np)
    bb = _pad2(b.astype(jnp.float32).reshape(1, N), 1, Np)
    out = pl.pallas_call(
        _gated_matmul_kernel,
        out_shape=jax.ShapeDtypeStruct((Mp, Np), jnp.float32),
        grid=(Mp // tm, Np // tn),
        in_specs=[
            pl.BlockSpec((tm, K), lambda i, j: (i, 0)),
            pl.BlockSpec((tm, K), lambda i, j: (i, 0)),
            pl.BlockSpec((K, tn), lambda i, j: (0, j)),
            pl.BlockSpec((1, tn), lambda i, j: (0, j)),
        ],
        out_specs=pl.BlockSpec((tm, tn), lambda i, j: (i, j)),
        compiler_params=pltpu.CompilerParams(
            dimension_semantics=("parallel", "parallel"),
            vmem_limit_bytes=_VMEM_LIMIT),
    )(yb, zb, wb, bb)
    return out[:M, :N]


# ---------------------------------------------------------------------------
# Fused SSM core kernel: causal conv1d + SiLU + x_dbl / dt projections +
# chunked selective scan.  One grid step per batch element.
# ---------------------------------------------------------------------------

def _ssm_core_kernel(xr_ref, cw_ref, cb_ref, wx_ref, wdt_ref, bdt_ref,
                     at_ref, dsk_ref, y_ref,
                     xc_scr, dl_scr, bm_scr, cm_scr,
                     *, L, Din, N, dt_rank, Kc, chunk):
    # ---- causal depthwise conv1d (kernel Kc) + SiLU, fully vectorized -----
    xr = xr_ref[0]                                    # (L, Din) f32
    cw = cw_ref[...]                                  # (Kc, Din)
    xpad = jnp.concatenate(
        [jnp.zeros((Kc - 1, Din), jnp.float32), xr], axis=0)
    acc = jnp.zeros((L, Din), jnp.float32)
    for k in range(Kc):                               # Kc small & static
        acc = acc + xpad[k:k + L, :] * cw[k:k + 1, :]
    xc = acc + cb_ref[...]
    xc = xc * jax.nn.sigmoid(xc)                      # SiLU
    xc_scr[...] = xc

    # ---- fused x_dbl projection: dt / B / C in a single MXU matmul --------
    xdbl = jnp.dot(xc.astype(jnp.bfloat16), wx_ref[...],
                   preferred_element_type=jnp.float32)   # (L, dt_rank + 2N)
    dt = xdbl[:, :dt_rank]                                # (L, dt_rank)
    bm_scr[...] = xdbl[:, dt_rank:dt_rank + N]
    cm_scr[...] = xdbl[:, dt_rank + N:dt_rank + 2 * N]

    # ---- delta = softplus(dt @ W_dt + b_dt).  K = dt_rank (<= 4), so do a
    # VPU broadcast-MAC instead of an MXU matmul. -----------------------------
    wdt = wdt_ref[...]                                # (dt_rank, Din)
    dl = jnp.zeros((L, Din), jnp.float32) + bdt_ref[...]
    for k in range(dt_rank):
        dl = dl + dt[:, k:k + 1] * wdt[k:k + 1, :]
    dl_scr[...] = jax.nn.softplus(dl)

    # ---- chunked selective scan --------------------------------------------
    a_t = at_ref[...]                                 # (N, Din)
    d_skip = dsk_ref[...]                             # (1, Din)
    n_chunks = L // chunk

    def chunk_body(c, h):
        base = pl.multiple_of(c * chunk, chunk)
        u_c = xc_scr[pl.ds(base, chunk), :]           # (chunk, Din)
        dl_c = dl_scr[pl.ds(base, chunk), :]          # (chunk, Din)
        b_c = bm_scr[pl.ds(base, chunk), :]           # (chunk, N)
        c_c = cm_scr[pl.ds(base, chunk), :]           # (chunk, N)
        # EUP exp + VPU multiplies taken off the serial critical path
        # (vectorized over the whole chunk).
        dA = jnp.exp(dl_c[:, None, :] * a_t[None, :, :])     # (chunk, N, Din)
        dBu = (dl_c * u_c)[:, None, :] * b_c[:, :, None]     # (chunk, N, Din)
        hs = []
        for t in range(chunk):                        # lightly unrolled
            h = dA[t] * h + dBu[t]                    # pure VPU FMA recurrence
            hs.append(h)
        h_all = jnp.stack(hs, axis=0)                 # (chunk, N, Din)
        y_c = jnp.sum(c_c[:, :, None] * h_all, axis=1) + d_skip * u_c
        # lane-dense, multi-sublane store once per chunk (no per-step vst.msk)
        y_ref[0, pl.ds(base, chunk), :] = y_c.astype(y_ref.dtype)
        return h

    h0 = jnp.zeros((N, Din), jnp.float32)
    jax.lax.fori_loop(0, n_chunks, chunk_body, h0)


def _pick_chunk(L):
    for c in (8, 4, 2):
        if L % c == 0:
            return c
    return 1


def ssm_core(xr, conv_w, conv_b, W_x, W_dt, b_dt, A, Dskip, *, d_state, dt_rank):
    """y = selective_scan(silu(conv1d(xr)), ...) with all projections fused."""
    Bsz, L, Din = xr.shape
    N = d_state
    Kc = conv_w.shape[1]
    F = dt_rank + 2 * N
    chunk = _pick_chunk(L)
    # TODO(synk): for d_inner < 128 fold a batch sub-block into the lane dim,
    # and add a Din-chunk "parallel" grid axis so the scan can occupy both
    # v7x TensorCores when the batch size is 1 / odd.
    return pl.pallas_call(
        functools.partial(_ssm_core_kernel, L=L, Din=Din, N=N,
                          dt_rank=dt_rank, Kc=Kc, chunk=chunk),
        out_shape=jax.ShapeDtypeStruct((Bsz, L, Din), jnp.float32),
        grid=(Bsz,),
        in_specs=[
            pl.BlockSpec((1, L, Din), lambda b: (b, 0, 0)),   # xr
            pl.BlockSpec((Kc, Din), lambda b: (0, 0)),        # conv_w^T
            pl.BlockSpec((1, Din), lambda b: (0, 0)),         # conv_b
            pl.BlockSpec((Din, F), lambda b: (0, 0)),         # W_x (bf16)
            pl.BlockSpec((dt_rank, Din), lambda b: (0, 0)),   # W_dt
            pl.BlockSpec((1, Din), lambda b: (0, 0)),         # b_dt
            pl.BlockSpec((N, Din), lambda b: (0, 0)),         # A^T
            pl.BlockSpec((1, Din), lambda b: (0, 0)),         # D skip
        ],
        out_specs=pl.BlockSpec((1, L, Din), lambda b: (b, 0, 0)),
        scratch_shapes=[
            pltpu.VMEM((L, Din), jnp.float32),   # u = silu(conv1d(xr))
            pltpu.VMEM((L, Din), jnp.float32),   # delta
            pltpu.VMEM((L, N), jnp.float32),     # B
            pltpu.VMEM((L, N), jnp.float32),     # C
        ],
        compiler_params=pltpu.CompilerParams(
            dimension_semantics=("parallel",),      # batch over TCs (v7x)
            vmem_limit_bytes=_VMEM_LIMIT),
    )(xr.astype(jnp.float32),
      conv_w.T.astype(jnp.float32),
      conv_b.reshape(1, Din).astype(jnp.float32),
      W_x.astype(jnp.bfloat16),
      W_dt.astype(jnp.float32),
      b_dt.reshape(1, Din).astype(jnp.float32),
      A.T.astype(jnp.float32),
      Dskip.reshape(1, Din).astype(jnp.float32))


# ---------------------------------------------------------------------------
# Conv glue — lane-dense (Cout, B*OH*OW) output; MAC hot path is the Pallas
# tiled matmul.
# ---------------------------------------------------------------------------

def conv2d(x, w, b, stride=1, padding=1, act="none"):
    """PyTorch-semantics Conv2d.  x: NCHW, w: (Cout, Cin, kh, kw)."""
    # TODO(synk): move im2col inside the tiled matmul kernel (halo BlockSpecs)
    # to avoid materializing the kh*kw-expanded patch matrix in HBM.
    B, Cin, H, W = x.shape
    Cout, _, kh, kw = w.shape
    xp = jnp.pad(x, ((0, 0), (0, 0), (padding, padding), (padding, padding)))
    OH = (H + 2 * padding - kh) // stride + 1
    OW = (W + 2 * padding - kw) // stride + 1
    cols = []
    for i in range(kh):
        for j in range(kw):
            cols.append(xp[:, :,
                           i:i + stride * (OH - 1) + 1:stride,
                           j:j + stride * (OW - 1) + 1:stride])
    patches = jnp.stack(cols, axis=2)                  # (B, Cin, kh*kw, OH, OW)
    K = Cin * kh * kw
    cols_mat = patches.reshape(B, K, OH * OW).transpose(1, 0, 2)
    cols_mat = cols_mat.reshape(K, B * OH * OW)        # (K, pixels) lane-dense
    wmat = w.reshape(Cout, K)
    y = matmul_bias_act(wmat, cols_mat, b, act=act, bias_rows=True)
    return y.reshape(Cout, B, OH, OW).transpose(1, 0, 2, 3)


def conv_transpose2d(x, w, b, stride, padding, act="none"):
    """PyTorch-semantics ConvTranspose2d.  w: (Cin, Cout, kh, kw)."""
    # TODO(synk): replace the zero-dilated input with a sub-pixel (phase)
    # decomposition to avoid multiplying stride^2-1 fractions of zeros.
    B, Cin, H, W = x.shape
    _, Cout, kh, kw = w.shape
    if stride > 1:
        xd = jnp.zeros((B, Cin, (H - 1) * stride + 1, (W - 1) * stride + 1),
                       x.dtype)
        xd = xd.at[:, :, ::stride, ::stride].set(x)
    else:
        xd = x
    we = jnp.flip(w, axis=(2, 3)).transpose(1, 0, 2, 3)   # (Cout, Cin, kh, kw)
    return conv2d(xd, we, b, stride=1, padding=kh - 1 - padding, act=act)


def pixel_unshuffle(x, r):
    B, C, H, W = x.shape
    x = x.reshape(B, C, H // r, r, W // r, r)
    x = x.transpose(0, 1, 3, 5, 2, 4)
    return x.reshape(B, C * r * r, H // r, W // r)


def pixel_shuffle(x, r):
    B, Cr2, H, W = x.shape
    C = Cr2 // (r * r)
    x = x.reshape(B, C, r, r, H, W)
    x = x.transpose(0, 1, 4, 2, 5, 3)
    return x.reshape(B, C, H * r, W * r)


# ---------------------------------------------------------------------------
# SSM (canonical Mamba selective-scan block; SSM source not in reference code)
# ---------------------------------------------------------------------------

def ssm_forward(p, x, ln_g, ln_b):
    # TODO(synk): exact SSM implementation is not included in the reference
    # source; this is the canonical Mamba SSM (in_proj, depthwise conv1d,
    # selective scan, SiLU gate, out_proj) with d_model/d_state as configured.
    B, L, D = x.shape
    d_inner = p["d_inner"]

    # fused LayerNorm + in_proj
    xz = ln_matmul_bias(x.reshape(B * L, D), ln_g, ln_b, p["W_in"], p["b_in"])
    xz = xz.reshape(B, L, 2 * d_inner)
    xr, z = xz[..., :d_inner], xz[..., d_inner:]

    A = -jnp.exp(p["A_log"])                          # (d_inner, d_state)
    y = ssm_core(xr, p["conv_w"], p["conv_b"], p["W_x"], p["W_dt"], p["b_dt"],
                 A, p["D"], d_state=p["d_state"], dt_rank=p["dt_rank"])

    # fused SiLU gate + out_proj
    out = gated_matmul_bias(y.reshape(B * L, d_inner),
                            z.reshape(B * L, d_inner),
                            p["W_out"], p["b_out"])
    return out.reshape(B, L, D)


def shuffled_ssm_forward(p, x, r):
    B, C, H, W = x.shape
    res = x
    xu = pixel_unshuffle(x, r)                        # (B, C*r^2, H/r, W/r)
    Cc, h2, w2 = C * r * r, H // r, W // r
    L = h2 * w2
    seq = xu.reshape(B, Cc, L).transpose(0, 2, 1)     # b (h w) c
    ys = ssm_forward(p["ssm"], seq, p["ln_g"], p["ln_b"])
    xb = ys.transpose(0, 2, 1).reshape(B, Cc, h2, w2)
    return pixel_shuffle(xb, r) + res


# ---------------------------------------------------------------------------
# Data consistency (sinogram) — approximated
# ---------------------------------------------------------------------------

def build_dc(image_size, theta, us_factor):
    # TODO(synk): DataConsistencySinogram source not provided; radon / back-
    # projection are approximated by a fixed dense Gaussian line-projection
    # matrix built from theta, with angle undersampling governed by us_factor.
    # For realistic CT sizes this should become an on-the-fly operator (and,
    # on v7x, A could additionally be streamed in fp8).
    H = W = image_size
    n_det = image_size
    n_theta = theta.shape[0]
    yy, xx = jnp.meshgrid(
        jnp.arange(H, dtype=jnp.float32) - (H - 1) / 2.0,
        jnp.arange(W, dtype=jnp.float32) - (W - 1) / 2.0,
        indexing="ij")
    t = (xx[None] * jnp.cos(theta)[:, None, None]
         + yy[None] * jnp.sin(theta)[:, None, None])          # (n_theta, H, W)
    det = jnp.arange(n_det, dtype=jnp.float32) - (n_det - 1) / 2.0
    A = jnp.exp(-0.5 * (t[:, None] - det[None, :, None, None]) ** 2)
    A = A.reshape(n_theta * n_det, H * W) / n_det
    mask = (jnp.arange(n_theta) % us_factor == 0).astype(jnp.float32)
    mask = jnp.repeat(mask, n_det).reshape(1, n_theta * n_det)
    # Pre-cast / pre-pad BOTH orientations of A once: removes per-call
    # cast+pad HBM round trips and any need for a trans_b (in-kernel
    # transposed) contraction in dc_forward.
    return {"A_rhs": prepare_rhs(A),        # resid @ A    -> image correction
            "AT_rhs": prepare_rhs(A.T),     # x @ A^T      -> sinogram predict
            "mask": mask, "lam": jnp.float32(0.1),
            "n_proj": n_theta * n_det, "hw": H * W}


def dc_forward(dc, x, s_target):
    B, C, H, W = x.shape
    assert C == 1, "DC layer assumes a single-channel image (out_channels=1)."
    xf = x.reshape(B, H * W)
    s_pred = matmul_bias_act(xf, dc["AT_rhs"],
                             jnp.zeros((dc["n_proj"],), jnp.float32))
    resid = dc["mask"] * (s_target.reshape(B, -1) - s_pred)
    corr = matmul_bias_act(resid, dc["A_rhs"],
                           jnp.zeros((dc["hw"],), jnp.float32))
    return (xf + dc["lam"] * corr).reshape(B, C, H, W)


# ---------------------------------------------------------------------------
# PSSM / refinement / MambaRollCT
# ---------------------------------------------------------------------------

def pssm_forward(p, x, dc, s_target):
    h = conv2d(x, p["enc1_w"], p["enc1_b"], stride=1, padding=1, act="silu")
    h = conv2d(h, p["enc2_w"], p["enc2_b"], stride=p["stride"], padding=1,
               act="silu")
    h = shuffled_ssm_forward(p["sssm"], h, p["shuffle_factor"])
    h = conv_transpose2d(h, p["dec1_w"], p["dec1_b"], stride=p["stride"],
                         padding=1, act="silu")
    h = conv2d(h, p["dec2_w"], p["dec2_b"], stride=1, padding=1, act="none")
    h_dc = dc_forward(dc, h, s_target)
    return jnp.concatenate([h, h_dc], axis=1)


def refinement_forward(p, x):
    h = conv2d(x, p["r1_w"], p["r1_b"], stride=1, padding=1, act="silu")
    return conv2d(h, p["r2_w"], p["r2_b"], stride=1, padding=1, act="none")


def mambaroll_ct_forward(params, x, s_target, theta, us_factor):
    dc = build_dc(x.shape[-1], theta, us_factor)
    x1 = x2 = x3 = None
    for _ in range(params["nroll"]):
        x1 = pssm_forward(params["pssm1"], x, dc, s_target)
        x2 = pssm_forward(params["pssm2"], x1, dc, s_target)
        x3 = pssm_forward(params["pssm3"],
                          jnp.concatenate([x1, x2], axis=1), dc, s_target)
        x = refinement_forward(params["refine"], x3)
    decoder_out = jnp.concatenate([x1[:, 1:], x2[:, 1:], x3[:, 1:]], axis=1)
    return x, decoder_out


# ---------------------------------------------------------------------------
# Deterministic parameter init (shapes follow the PyTorch __init__)
# ---------------------------------------------------------------------------

def _conv_init(key, cout, cin, k):
    w = jax.random.normal(key, (cout, cin, k, k), jnp.float32) / math.sqrt(cin * k * k)
    return w, jnp.zeros((cout,), jnp.float32)


def _convT_init(key, cin, cout, k):
    w = jax.random.normal(key, (cin, cout, k, k), jnp.float32) / math.sqrt(cin * k * k)
    return w, jnp.zeros((cout,), jnp.float32)


def _scale_to_kernel_stride(scale):
    if scale == 0.25:
        return 6, 4
    if scale == 0.5:
        return 4, 2
    if scale == 1:
        return 3, 1
    raise ValueError("Invalid scale. Must be one of [0.25, 0.5, 1]")


def init_ssm(key, d_model, d_state, d_conv=4, expand=2):
    d_inner = expand * d_model
    dt_rank = max(1, math.ceil(d_model / 16))
    ks = jax.random.split(key, 6)
    return {
        "W_in": jax.random.normal(ks[0], (d_model, 2 * d_inner), jnp.float32) / math.sqrt(d_model),
        "b_in": jnp.zeros((2 * d_inner,), jnp.float32),
        "conv_w": jax.random.normal(ks[1], (d_inner, d_conv), jnp.float32) * 0.2,
        "conv_b": jnp.zeros((d_inner,), jnp.float32),
        "W_x": jax.random.normal(ks[2], (d_inner, dt_rank + 2 * d_state), jnp.float32) / math.sqrt(d_inner),
        "W_dt": jax.random.normal(ks[3], (dt_rank, d_inner), jnp.float32) / math.sqrt(dt_rank),
        "b_dt": jax.random.normal(ks[4], (d_inner,), jnp.float32) * 0.1,
        "A_log": jnp.log(jnp.broadcast_to(
            jnp.arange(1, d_state + 1, dtype=jnp.float32), (d_inner, d_state))),
        "D": jnp.ones((d_inner,), jnp.float32),
        "W_out": jax.random.normal(ks[5], (d_inner, d_model), jnp.float32) / math.sqrt(d_inner),
        "b_out": jnp.zeros((d_model,), jnp.float32),
        "d_inner": d_inner,
        "d_state": d_state,
        "dt_rank": dt_rank,
    }


def init_pssm(key, cin, cout, mc, scale, shuffle_factor, d_state):
    k, s = _scale_to_kernel_stride(scale)
    ks = jax.random.split(key, 5)
    d_model = mc * shuffle_factor ** 2
    enc1_w, enc1_b = _conv_init(ks[0], mc, cin, 3)
    enc2_w, enc2_b = _conv_init(ks[1], mc, mc, k)
    dec1_w, dec1_b = _convT_init(ks[2], mc, mc, k)
    dec2_w, dec2_b = _conv_init(ks[3], cout, mc, 3)
    return {
        "stride": s, "kernel": k, "shuffle_factor": shuffle_factor,
        "enc1_w": enc1_w, "enc1_b": enc1_b,
        "enc2_w": enc2_w, "enc2_b": enc2_b,
        "dec1_w": dec1_w, "dec1_b": dec1_b,
        "dec2_w": dec2_w, "dec2_b": dec2_b,
        "sssm": {
            "ln_g": jnp.ones((d_model,), jnp.float32),
            "ln_b": jnp.zeros((d_model,), jnp.float32),
            "ssm": init_ssm(ks[4], d_model, d_state),
        },
    }


def init_mambaroll(key, nroll, in_channels, out_channels, model_channels,
                   scales, shuffle_factors, d_state):
    ks = jax.random.split(key, 5)
    r1_w, r1_b = _conv_init(ks[3], model_channels[2], out_channels * 2, 3)
    r2_w, r2_b = _conv_init(ks[4], out_channels, model_channels[2], 3)
    return {
        "nroll": nroll,
        "pssm1": init_pssm(ks[0], in_channels, out_channels, model_channels[0],
                           scales[0], shuffle_factors[0], d_state),
        "pssm2": init_pssm(ks[1], in_channels * 2, out_channels, model_channels[1],
                           scales[1], shuffle_factors[1], d_state),
        "pssm3": init_pssm(ks[2], in_channels * 4, out_channels, model_channels[2],
                           scales[2], shuffle_factors[2], d_state),
        "refine": {"r1_w": r1_w, "r1_b": r1_b, "r2_w": r2_w, "r2_b": r2_b},
    }


# ---------------------------------------------------------------------------

if __name__ == "__main__":
    key = jax.random.PRNGKey(0)
    kx, ks, kp = jax.random.split(key, 3)

    B, H = 2, 16
    n_theta, us_factor = 8, 2
    theta = jnp.linspace(0.0, math.pi, n_theta, endpoint=False).astype(jnp.float32)

    x = jax.random.normal(kx, (B, 1, H, H), jnp.float32)
    s_target = jax.random.normal(ks, (B, 1, n_theta, H), jnp.float32)

    params = init_mambaroll(
        kp, nroll=2, in_channels=1, out_channels=1,
        model_channels=(4, 4, 4), scales=(0.25, 0.5, 1),
        shuffle_factors=(2, 2, 4), d_state=8)

    out, decoder_out = mambaroll_ct_forward(params, x, s_target, theta, us_factor)
    jax.block_until_ready((out, decoder_out))

    assert out.shape == (B, 1, H, H), out.shape
    assert decoder_out.shape == (B, 3, H, H), decoder_out.shape
    print("KERNEL_OK")
</pallas_src>

<mosaic_0001>
module attributes {stable_mosaic.version = 11 : i64} {
  func.func @_matmul_bias_act_kernel(%arg0: i32, %arg1: i32, %arg2: i32, %arg3: memref<4x9xbf16, #tpu.memory_space<vmem>>, %arg4: memref<9x512xbf16, #tpu.memory_space<vmem>>, %arg5: memref<4x1xf32, #tpu.memory_space<vmem>>, %arg6: memref<4x512xf32, #tpu.memory_space<vmem>>, %arg7: memref<4x512xf32, #tpu.memory_space<vmem>>) attributes {dimension_semantics = [#tpu.dimension_semantics<parallel>, #tpu.dimension_semantics<parallel>, #tpu.dimension_semantics<arbitrary>], iteration_bounds = array<i64: 1, 1, 1>, scalar_prefetch = 0 : i64, scratch_operands = 1 : i64, tpu.core_type = #tpu.core_type<tc>, window_params = [{transform_indices = @transform_0, window_bounds = array<i64: 4, 9>}, {transform_indices = @transform_1, window_bounds = array<i64: 9, 512>}, {transform_indices = @transform_2, window_bounds = array<i64: 4, 1>}, {transform_indices = @transform_3, window_bounds = array<i64: 4, 512>}]} {
    %c0_i32 = arith.constant 0 : i32
    %0 = arith.cmpi eq, %arg2, %c0_i32 : i32
    %1 = arith.extui %0 : i1 to i32
    %c0_i32_0 = arith.constant 0 : i32
    %2 = arith.cmpi ne, %1, %c0_i32_0 : i32
    scf.if %2 {
      %cst_10 = arith.constant 0.000000e+00 : f32
      %12 = vector.broadcast %cst_10 : f32 to vector<4x512xf32>
      %c0_11 = arith.constant 0 : index
      %c0_12 = arith.constant 0 : index
      %13 = vector.load %arg7[%c0_11, %c0_12] : memref<4x512xf32, #tpu.memory_space<vmem>>, vector<4x512xf32>
      tpu.vector_store %arg7[%c0_11, %c0_12], %12 {strides = array<i32>} : memref<4x512xf32, #tpu.memory_space<vmem>>, vector<4x512xf32>,
    } else {
    }
    %c0 = arith.constant 0 : index
    %c0_1 = arith.constant 0 : index
    %3 = vector.load %arg7[%c0, %c0_1] : memref<4x512xf32, #tpu.memory_space<vmem>>, vector<4x512xf32>
    %c0_2 = arith.constant 0 : index
    %c0_3 = arith.constant 0 : index
    %4 = vector.load %arg3[%c0_2, %c0_3] : memref<4x9xbf16, #tpu.memory_space<vmem>>, vector<4x9xbf16>
    %c0_4 = arith.constant 0 : index
    %c0_5 = arith.constant 0 : index
    %5 = vector.load %arg4[%c0_4, %c0_5] : memref<9x512xbf16, #tpu.memory_space<vmem>>, vector<9x512xbf16>
    %cst = arith.constant dense<0.000000e+00> : vector<4x512xf32>
    %6 = tpu.matmul %4, %5, %cst {dimension_numbers = #tpu.dot_dimension_numbers<[1], [0], [0], [1], [0, 0, 1, 1], [], []>} : vector<4x9xbf16>, vector<9x512xbf16>, vector<4x512xf32> -> vector<4x512xf32>
    %7 = arith.addf %3, %6 : vector<4x512xf32>
    %c0_6 = arith.constant 0 : index
    %c0_7 = arith.constant 0 : index
    %8 = vector.load %arg7[%c0_6, %c0_7] : memref<4x512xf32, #tpu.memory_space<vmem>>, vector<4x512xf32>
    tpu.vector_store %arg7[%c0_6, %c0_7], %7 {strides = array<i32>} : memref<4x512xf32, #tpu.memory_space<vmem>>, vector<4x512xf32>,
    %c0_i32_8 = arith.constant 0 : i32
    %9 = arith.cmpi eq, %arg2, %c0_i32_8 : i32
    %10 = arith.extui %9 : i1 to i32
    %c0_i32_9 = arith.constant 0 : i32
    %11 = arith.cmpi ne, %10, %c0_i32_9 : i32
    scf.if %11 {
      %c0_10 = arith.constant 0 : index
      %c0_11 = arith.constant 0 : index
      %12 = vector.load %arg7[%c0_10, %c0_11] : memref<4x512xf32, #tpu.memory_space<vmem>>, vector<4x512xf32>
      %c0_12 = arith.constant 0 : index
      %c0_13 = arith.constant 0 : index
      %13 = vector.load %arg5[%c0_12, %c0_13] : memref<4x1xf32, #tpu.memory_space<vmem>>, vector<4x1xf32>
      %14 = vector.broadcast %13 : vector<4x1xf32> to vector<4x512xf32>
      %15 = arith.addf %12, %14 : vector<4x512xf32>
      %16 = arith.negf %15 : vector<4x512xf32>
      %17 = math.exp %16 : vector<4x512xf32>
      %cst_14 = arith.constant 1.000000e+00 : f32
      %18 = vector.broadcast %cst_14 : f32 to vector<4x512xf32>
      %19 = arith.addf %18, %17 : vector<4x512xf32>
      %20 = arith.divf %18, %19 : vector<4x512xf32>
      %21 = arith.mulf %15, %20 : vector<4x512xf32>
      %c0_15 = arith.constant 0 : index
      %c0_16 = arith.constant 0 : index
      %22 = vector.load %arg6[%c0_15, %c0_16] : memref<4x512xf32, #tpu.memory_space<vmem>>, vector<4x512xf32>
      tpu.vector_store %arg6[%c0_15, %c0_16], %21 {strides = array<i32>} : memref<4x512xf32, #tpu.memory_space<vmem>>, vector<4x512xf32>,
    } else {
    }
    return
  }
  func.func @transform_0(%arg0: i32, %arg1: i32, %arg2: i32) -> (i32, i32) {
    %c0_i32 = arith.constant 0 : i32
    return %arg0, %arg2 : i32, i32
  }
  func.func @transform_1(%arg0: i32, %arg1: i32, %arg2: i32) -> (i32, i32) {
    %c0_i32 = arith.constant 0 : i32
    return %arg2, %arg1 : i32, i32
  }
  func.func @transform_2(%arg0: i32, %arg1: i32, %arg2: i32) -> (i32, i32) {
    %c0_i32 = arith.constant 0 : i32
    %c0_i32_0 = arith.constant 0 : i32
    return %arg0, %c0_i32 : i32, i32
  }
  func.func @transform_3(%arg0: i32, %arg1: i32, %arg2: i32) -> (i32, i32) {
    %c0_i32 = arith.constant 0 : i32
    return %arg0, %arg1 : i32, i32
  }
}

</mosaic_0001>

<bundles_post_ra>
// kernel: tpu_custom_call.1
= control target key start
LH: loop header
LB: loop body
LE: loop exit
PB: predicated region body
PF: predicated region fallthrough
CT: control target
= control target key end

     0   :  { %8 = vsyncpa [#allocation4], 0  ;;  %s337_s0 = inlined_call_operand.vmem [shape: bf16[4,9], index: 0, kind: input, shape index: {}]   ;;  %s338_s1 = inlined_call_operand.hbm [shape: bf16[9,512], index: 1, kind: input, shape index: {}]   ;;  %s339_s2 = inlined_call_operand.vmem [shape: f32[4,1], index: 2, kind: input, shape index: {}]   ;;  %s340_s3 = inlined_call_operand.hbm [shape: f32[4,512], index: 3, kind: output, shape index: {}]  }
   0x1   :  { %9 = vsyncpa [#allocation5], 0  ;;  %s298_s12 = smov [#allocation3]  }
   0x2   :  { %s17_s13 = sshll.u32 %s298_s12, 4  ;;  %s18_s13 = int_to_ptr.vmem [resolvable:$true] %s17_s13 }
   0x3   :  { %s262_s14 = scalar_lea.vmem %s18_s13, 512  ;;  %p267_p1 = scmp.lt.s32.totalorder %s18_s13, %s18_s13 }
   0x4   :  { %p263_p0 = scmp.ne.s32.totalorder %s18_s13, %s262_s14  ;;  %p268_p2 = scmp.lt.s32.totalorder %s262_s14, %s262_s14 }
   0x6   :  { %p269_p3 = por %p268_p2, %p267_p1 }
   0x8   :  { %p270_p4 = pnand %p269_p3, %p263_p0 }
   0xa   :  { %273 = shalt.err (!%p270_p4)
}
   0xb   :  { %s299_s15 = smov 256   ;;  %s300_s16 = smov 16  }
   0xc   :  { %23 = dma.hbm_to_vmem [thread:$0]  %s338_s1, 512, %s18_s13, [#allocation4], %s299_s15, %s299_s15, %s300_s16  }
   0xd   :  { %294 = dma.done.wait [#allocation4], 512  }
   0xe   :  { %295 = vsyncadd [#allocation4], 4294966784  ;;  %vm63_vm0 = vcmask 1043456   ;;  %v301_v0 = vmov 0   ;;  %vm64_vm1 = vcmask 1044480   ;;  %v302_v1 = vmov 65535  }
   0xf   :  { %111 = vmatprep.mubr.bf16.mxu0 %v301_v0  ;;  %152 = vmatprep.mubr.bf16.mxu1 %v301_v0  ;;  %v65_v2 = vsel %vm63_vm0, 4294967295, %v302_v1  ;;  %v240_v4 = vld [vmem:[#allocation3 + $0x4] ss:$16 sps:$4 sm:$0x1f]   ;;  %v178_v10 = vld [vmem:[%s339_s2] sm:$0xf]  ;;  %v186_v16 = vlaneseq }
  0x10   :  { %239 = vset.pattern.permute.xlu0 %v301_v0  ;;  %v66_v3 = vsel %vm64_vm1, %v65_v2, 0  ;;  %v242_v5 = vld [vmem:[#allocation3 + $0xc] ss:$16 sps:$4 sm:$0x1f]   ;;  %v38_v13 = vld [vmem:[%s337_s0] sm:$0x3] }
  0x11   :  { %v71_v6 = vand.u32 %v240_v4, %v66_v3  ;;  %v244_v7 = vld [vmem:[#allocation3] ss:$16 sps:$4 sm:$0x1f]   ;;  %v245_v8 = vld [vmem:[#allocation3 + $0x8] ss:$16 sps:$4 sm:$0x1f]   ;;  %v77_v9 = vand.u32 %v242_v5, %v66_v3  ;;  %181 = vperm.xlu0 %239, %v178_v10  }
  0x12   :  { %v68_v11 = vand.u32 %v244_v7, %v66_v3  ;;  %v74_v12 = vand.u32 %v245_v8, %v66_v3  ;;  %vm59_vm2 = vcmask 72704   ;;  %v303_v14 = vmov 839922192   ;;  %s304_s0 = smov [#allocation6]  }
  0x13   :  { %93 = vmatprep.subr.bf16.mxu0 %v71_v6  ;;  %134 = vmatprep.subr.bf16.mxu1 %v77_v9  ;;  %v184_v15 = vunpack.c.l.s4 %v303_v14  ;;  %v187_v18 = vshrl.u32 %v186_v16, 7  ;;  %s215_s2 = sshll.u32 %s304_s0, 4  ;;  %s216_s2 = int_to_ptr.vmem [resolvable:$true] %s215_s2 }
  0x14   :  { %94 = vmatpush1.bf16.msra.mxu0 %v68_v11  ;;  %135 = vmatpush1.bf16.msra.mxu1 %v74_v12  ;;  %s274_s22 = scalar_lea.vmem %s216_s2, 256  ;;  %p279_p6 = scmp.lt.s32.totalorder %s216_s2, %s216_s2 }
  0x15   :  { %v185_v17 = vunpack.c.0.s8 %v184_v15  ;;  %p275_p5 = scmp.ne.s32.totalorder %s216_s2, %s274_s22  ;;  %p280_p7 = scmp.lt.s32.totalorder %s274_s22, %s274_s22 }
  0x17   :  { %228 = vmatmul.mubr.msk.bf16.vlgmr.msra.gmra.mxu0 %vm59_vm2, %v38_v13  ;;  %229 = vmatmul.mubr.msk.bf16.vlgmr.msra.gmra.mxu1 %vm59_vm2, %v38_v13  ;;  %v188_v19 = vsub.s32 %v185_v17, %v187_v18  ;;  %p281_p8 = por %p280_p7, %p279_p6 }
  0x19   :  { %p282_p9 = pnand %p281_p8, %p275_p5 }
  0x8c   :  { %v182_v20 = vpop.permute.xlu0 %181 }
  0x8d   :  { %v189_v23 = vrot.slane %v182_v20, %v188_v19 }
  0xd7   :  { %v113_v21 = vpop.f32.mrf.mxu0  ;;  %v154_v22 = vpop.f32.mrf.mxu1 }
  0xd9   :  { %v115_v24 = vpop.f32.mrf.mxu0  ;;  %v156_v25 = vpop.f32.mrf.mxu1 }
  0xda   :  { %v165_v26 = vcombine.low %v113_v21, %v115_v24  ;;  %v166_v27 = vcombine.low %v154_v22, %v156_v25 }
  0xdb   :  { %v117_v28 = vpop.f32.mrf.mxu0  ;;  %v158_v29 = vpop.f32.mrf.mxu1 }
  0xdc   :  { %v191_v30 = vadd.f32 %v189_v23, %v165_v26  ;;  %v192_v31 = vadd.f32 %v189_v23, %v166_v27 }
  0xdd   :  { %v118_v32 = vpop.f32.mrf.mxu0  ;;  %v159_v33 = vpop.f32.mrf.mxu1 }
  0xde   :  { %v230_v34 = vmul.f32 -1.442695, %v191_v30  ;;  %v231_v35 = vmul.f32 -1.442695, %v192_v31 }
  0xe0   :  { %246 = vpow2.f32 %v230_v34 }
  0xe1   :  { %248 = vpow2.f32 %v231_v35 }
  0xed   :  { %v247_v36 = vpop.eup %246 }
  0xee   :  { %v249_v37 = vpop.eup %248  ;;  %v199_v38 = vadd.f32 1.0, %v247_v36 }
  0xef   :  { %v200_v39 = vadd.f32 1.0, %v249_v37 }
  0xf0   :  { %250 = vrcp.f32 %v199_v38 }
  0xf1   :  { %252 = vrcp.f32 %v200_v39 }
  0xfd   :  { %v251_v40 = vpop.eup %250 }
  0xfe   :  { %v253_v41 = vpop.eup %252  ;;  %v205_v42 = vmul.f32 %v251_v40, %v191_v30 }
  0xff   :  { %v206_v43 = vmul.f32 %v253_v41, %v192_v31 }
 0x100   :  { %207 = vst [vmem:[#allocation6] sm:$0xff] %v205_v42 }
 0x101   :  { %208 = vst [vmem:[#allocation6 + $0x8] sm:$0xff] %v206_v43 }
 0x102   :  { %285 = shalt.err (!%p282_p9)
}
 0x103   :  { %218 = dma.vmem_to_hbm [thread:$0]  %s216_s2, 256, %s340_s3, [#allocation5]  }
 0x104   :  { %296 = dma.done.wait [#allocation5], 256  }
 0x105   :  { %297 = vsyncadd [#allocation5], 4294967040 }
 0x106   :  { %222 = vsyncpa [#allocation4], 1 }
 0x107   :  { %223 = vsyncpa [#allocation5], 1 }

</bundles_post_ra>
